<compile_context>
chip_gen: v7x
topology: tpu7x:2x2x1
jax: 0.10.0
libtpu: 0.0.40
codegen_flags: <defaults>
</compile_context>

<pallas_src>
import functools
import math

import jax
import jax.numpy as jnp
from jax.experimental import pallas as pl
from jax.experimental.pallas import tpu as pltpu


_MATMUL_DTYPE = jnp.bfloat16          # MXU operand dtype (f32 accumulation)
_VMEM_STEP_BUDGET = 20 * 1024 * 1024  # per-step block budget (v7x-safe)


def _pick_tile(dim, candidates):
    """Largest MXU-friendly tile that divides `dim`, else the full dim."""
    for c in candidates:
        if c <= dim and dim % c == 0:
            return c
    return dim


def _vmem_limit(est_bytes):
    """Explicit scoped-VMEM limit with headroom, capped at v7x physical."""
    return int(min(64 * 1024 * 1024, max(32 * 1024 * 1024, 1.5 * est_bytes)))


# --------------------------------------------------------------------------
# Tiled linear projection:  y = x @ W + b
# --------------------------------------------------------------------------
def _linear_kernel(x_ref, w_ref, b_ref, o_ref, acc_ref):
    k = pl.program_id(2)

    @pl.when(k == 0)
    def _():
        acc_ref[...] = jnp.zeros_like(acc_ref)

    # bf16 operands (full-rate MXU), f32 accumulation.
    acc_ref[...] += jnp.dot(
        x_ref[...].astype(_MATMUL_DTYPE),
        w_ref[...].astype(_MATMUL_DTYPE),
        preferred_element_type=jnp.float32,
    )

    @pl.when(k == pl.num_programs(2) - 1)
    def _():
        o_ref[...] = (acc_ref[...] + b_ref[...].astype(jnp.float32)).astype(
            o_ref.dtype
        )


def _linear_tiles(N, Din, Dout, budget_bytes=_VMEM_STEP_BUDGET):
    tm = _pick_tile(N, (512, 256, 128, 64, 32, 16, 8))
    tn = _pick_tile(Dout, (256, 128))
    tk = _pick_tile(Din, (1024, 512, 256, 128))

    def est(tm_, tn_, tk_):
        # double-buffered x/w/out/bias blocks (f32 in HBM) + f32 accumulator
        return 4 * (2 * (tm_ * tk_ + tk_ * tn_ + tm_ * tn_ + tn_) + tm_ * tn_)

    # Shrink the reduction tile first, then tm, to stay inside the budget.
    while est(tm, tn, tk) > budget_bytes and tk > 128 and Din % (tk // 2) == 0:
        tk //= 2
    while est(tm, tn, tk) > budget_bytes and tm > 64 and N % (tm // 2) == 0:
        tm //= 2
    return tm, tn, tk, est(tm, tn, tk)


def linear(x2d, w, b):
    """y = x2d @ w + b   (x2d: (N, Din), w: (Din, Dout), b: (Dout,))."""
    N, Din = x2d.shape
    Dout = w.shape[1]
    tm, tn, tk, vmem_est = _linear_tiles(N, Din, Dout)
    grid = (N // tm, Dout // tn, Din // tk)

    b2d = b.reshape(1, Dout)
    flops = 2 * N * Din * Dout
    bytes_accessed = 4 * (N * Din + Din * Dout + N * Dout + Dout)

    return pl.pallas_call(
        _linear_kernel,
        out_shape=jax.ShapeDtypeStruct((N, Dout), x2d.dtype),
        grid_spec=pltpu.PrefetchScalarGridSpec(
            num_scalar_prefetch=0,
            grid=grid,
            in_specs=[
                pl.BlockSpec((tm, tk), lambda i, j, k: (i, k)),
                pl.BlockSpec((tk, tn), lambda i, j, k: (k, j)),
                pl.BlockSpec((1, tn), lambda i, j, k: (0, j)),
            ],
            out_specs=pl.BlockSpec((tm, tn), lambda i, j, k: (i, j)),
            scratch_shapes=[pltpu.VMEM((tm, tn), jnp.float32)],
        ),
        compiler_params=pltpu.CompilerParams(
            dimension_semantics=("parallel", "parallel", "arbitrary"),
            vmem_limit_bytes=_vmem_limit(vmem_est),
        ),
        cost_estimate=pl.CostEstimate(
            flops=flops, transcendentals=0, bytes_accessed=bytes_accessed
        ),
    )(x2d, w, b2d)


# --------------------------------------------------------------------------
# Multi-head scaled dot-product attention (heads packed in the lane dim)
# --------------------------------------------------------------------------
def _attention_kernel(q_ref, k_ref, v_ref, o_ref, out_scratch, *, num_heads):
    # q/o blocks: (1, tq, D), k/v blocks: (1, Sk, D), scratch: (tq, D) f32
    D = q_ref.shape[-1]
    Dh = D // num_heads
    scale = 1.0 / math.sqrt(Dh)

    # Fold 1/sqrt(d) into Q (f32), then cast matmul operands to bf16 once.
    q = (q_ref[0] * scale).astype(_MATMUL_DTYPE)
    k = k_ref[0].astype(_MATMUL_DTYPE)
    v = v_ref[0].astype(_MATMUL_DTYPE)

    for h in range(num_heads):  # static unroll; one head live at a time
        lo, hi = h * Dh, (h + 1) * Dh
        qh = q[:, lo:hi]
        kh = k[:, lo:hi]
        vh = v[:, lo:hi]

        # Scores + softmax statistics stay in f32 (VPU/EUP have no f32 penalty
        # here and v5e has no bf16 VPU path anyway).
        s = jnp.einsum("qd,kd->qk", qh, kh, preferred_element_type=jnp.float32)
        m = jnp.max(s, axis=-1, keepdims=True)
        p = jnp.exp(s - m)
        denom = jnp.sum(p, axis=-1, keepdims=True)

        # Unnormalized P @ V, then normalize the (tq, Dh) result -> the
        # elementwise stream shrinks by Sk/Dh vs normalizing P.
        pv = jnp.einsum(
            "qk,kd->qd",
            p.astype(_MATMUL_DTYPE),
            vh,
            preferred_element_type=jnp.float32,
        )
        out_scratch[:, lo:hi] = pv * pl.reciprocal(denom, approx=True)

    # Single lane-dense store of the whole (tq, D) slab.
    o_ref[0] = out_scratch[...].astype(o_ref.dtype)


def _attn_q_tile(Sq, Sk, D, budget_bytes=_VMEM_STEP_BUDGET):
    def est(tq):
        blocks = 2 * (tq * D + 2 * Sk * D + tq * D)  # dbl-buffered Q,K,V,O
        scratch = tq * D                             # f32 output slab
        scores = tq * Sk                             # one head's f32 scores
        return 4 * (blocks + scratch + scores)

    tq = _pick_tile(Sq, (512, 256, 128, 64, 32, 16, 8))
    while est(tq) > budget_bytes and tq > 8 and Sq % (tq // 2) == 0:
        tq //= 2
    return tq, est(tq)


def dot_product_attention(q, k, v, num_heads):
    """q: (B, Sq, D); k, v: (B, Sk, D). Heads packed along D. -> (B, Sq, D)."""
    B, Sq, D = q.shape
    Sk = k.shape[1]
    assert D % num_heads == 0
    Dh = D // num_heads

    tq, vmem_est = _attn_q_tile(Sq, Sk, D)
    kernel = functools.partial(_attention_kernel, num_heads=num_heads)

    flops = 4 * B * num_heads * Sq * Sk * Dh
    bytes_accessed = 4 * (2 * B * Sq * D + 2 * B * Sk * D)

    return pl.pallas_call(
        kernel,
        out_shape=jax.ShapeDtypeStruct((B, Sq, D), q.dtype),
        grid_spec=pltpu.PrefetchScalarGridSpec(
            num_scalar_prefetch=0,
            grid=(B, Sq // tq),
            in_specs=[
                pl.BlockSpec((1, tq, D), lambda b, qi: (b, qi, 0)),
                # K/V index maps are independent of qi -> blocks stay resident.
                pl.BlockSpec((1, Sk, D), lambda b, qi: (b, 0, 0)),
                pl.BlockSpec((1, Sk, D), lambda b, qi: (b, 0, 0)),
            ],
            out_specs=pl.BlockSpec((1, tq, D), lambda b, qi: (b, qi, 0)),
            scratch_shapes=[pltpu.VMEM((tq, D), jnp.float32)],
        ),
        compiler_params=pltpu.CompilerParams(
            dimension_semantics=("parallel", "parallel"),
            vmem_limit_bytes=_vmem_limit(vmem_est),
        ),
        cost_estimate=pl.CostEstimate(
            flops=flops,
            transcendentals=B * num_heads * Sq * Sk,
            bytes_accessed=bytes_accessed,
        ),
    )(q, k, v)


# --------------------------------------------------------------------------
# Full MultiHeadAttention forward (no HBM transposes for head split/merge)
# --------------------------------------------------------------------------
def multi_head_attention(query, key, value, params, num_heads):
    """query/key/value: (B, S, D_in). Returns (B, Sq, num_hiddens)."""
    B, Sq, _ = query.shape
    H = params["w_q"].shape[1]

    def proj(x, w, b):
        Bx, Sx, Din = x.shape
        y = linear(x.reshape(Bx * Sx, Din), w, b)
        return y.reshape(Bx, Sx, w.shape[1])

    if query is key and key is value:
        # Self-attention: fuse the three projections -> activation read once,
        # one kernel launch, 3x wider output tiles.
        w_qkv = jnp.concatenate(
            [params["w_q"], params["w_k"], params["w_v"]], axis=1
        )
        b_qkv = jnp.concatenate(
            [params["b_q"], params["b_k"], params["b_v"]], axis=0
        )
        qkv = proj(query, w_qkv, b_qkv)  # (B, S, 3H)
        q, k, v = qkv[..., :H], qkv[..., H : 2 * H], qkv[..., 2 * H :]
    else:
        # Heads stay packed in the feature dim -> no transpose needed; head h
        # lives in channels [h*Dh, (h+1)*Dh), exactly what transpose_qkv /
        # transpose_output would have produced.
        q = proj(query, params["w_q"], params["b_q"])
        k = proj(key, params["w_k"], params["b_k"])
        v = proj(value, params["w_v"], params["b_v"])

    attn = dot_product_attention(q, k, v, num_heads)  # (B, Sq, H)

    out = linear(attn.reshape(B * Sq, H), params["w_o"], params["b_o"])
    return out.reshape(B, Sq, H)


# --------------------------------------------------------------------------
# Deterministic parameter init, plain-JAX reference, example run
# --------------------------------------------------------------------------
def init_params(key, key_size, query_size, value_size, num_hiddens):
    keys = jax.random.split(key, 8)

    def lin_init(kw, kb, fan_in, fan_out):
        bound = 1.0 / math.sqrt(fan_in)
        w = jax.random.uniform(kw, (fan_in, fan_out), jnp.float32, -bound, bound)
        b = jax.random.uniform(kb, (fan_out,), jnp.float32, -bound, bound)
        return w, b

    w_q, b_q = lin_init(keys[0], keys[1], query_size, num_hiddens)
    w_k, b_k = lin_init(keys[2], keys[3], key_size, num_hiddens)
    w_v, b_v = lin_init(keys[4], keys[5], value_size, num_hiddens)
    w_o, b_o = lin_init(keys[6], keys[7], num_hiddens, num_hiddens)
    return dict(w_q=w_q, b_q=b_q, w_k=w_k, b_k=b_k,
                w_v=w_v, b_v=b_v, w_o=w_o, b_o=b_o)


def _reference(query, key, value, params, num_heads):
    def proj(x, w, b):
        return x @ w + b

    def split(x):
        B, S, D = x.shape
        x = x.reshape(B, S, num_heads, D // num_heads)
        return jnp.transpose(x, (0, 2, 1, 3))

    q = split(proj(query, params["w_q"], params["b_q"]))
    k = split(proj(key, params["w_k"], params["b_k"]))
    v = split(proj(value, params["w_v"], params["b_v"]))
    d = q.shape[-1]
    s = jnp.einsum("bhqd,bhkd->bhqk", q, k) / math.sqrt(d)
    p = jax.nn.softmax(s, axis=-1)
    o = jnp.einsum("bhqk,bhkd->bhqd", p, v)
    B, H, Sq, Dh = o.shape
    o = jnp.transpose(o, (0, 2, 1, 3)).reshape(B, Sq, H * Dh)
    return o @ params["w_o"] + params["b_o"]


if __name__ == "__main__":
    B, S = 2, 8
    key_size = query_size = value_size = 32
    num_hiddens = 32
    num_heads = 4

    root = jax.random.PRNGKey(0)
    k_par, k_q, k_k, k_v = jax.random.split(root, 4)

    params = init_params(k_par, key_size, query_size, value_size, num_hiddens)
    q = jax.random.normal(k_q, (B, S, query_size), jnp.float32)
    k = jax.random.normal(k_k, (B, S, key_size), jnp.float32)
    v = jax.random.normal(k_v, (B, S, value_size), jnp.float32)

    # Cross-attention-style call (separate q, k, v).
    out = jax.block_until_ready(multi_head_attention(q, k, v, params, num_heads))
    assert out.shape == (B, S, num_hiddens)
    ref = jax.block_until_ready(_reference(q, k, v, params, num_heads))
    assert jnp.allclose(out, ref, atol=1e-2, rtol=1e-2), "mismatch vs reference"

    # Self-attention call exercises the fused-QKV path.
    out_sa = jax.block_until_ready(multi_head_attention(q, q, q, params, num_heads))
    ref_sa = jax.block_until_ready(_reference(q, q, q, params, num_heads))
    assert jnp.allclose(out_sa, ref_sa, atol=1e-2, rtol=1e-2), "self-attn mismatch"

    print("KERNEL_OK")
</pallas_src>

<mosaic_0001>
module attributes {stable_mosaic.version = 11 : i64} {
  func.func @_linear_kernel(%arg0: i32, %arg1: i32, %arg2: i32, %arg3: memref<16x32xf32, #tpu.memory_space<vmem>>, %arg4: memref<32x32xf32, #tpu.memory_space<vmem>>, %arg5: memref<1x32xf32, #tpu.memory_space<vmem>>, %arg6: memref<16x32xf32, #tpu.memory_space<vmem>>, %arg7: memref<16x32xf32, #tpu.memory_space<vmem>>) attributes {dimension_semantics = [#tpu.dimension_semantics<parallel>, #tpu.dimension_semantics<parallel>, #tpu.dimension_semantics<arbitrary>], iteration_bounds = array<i64: 1, 1, 1>, scalar_prefetch = 0 : i64, scratch_operands = 1 : i64, tpu.core_type = #tpu.core_type<tc>, window_params = [{transform_indices = @transform_0, window_bounds = array<i64: 16, 32>}, {transform_indices = @transform_1, window_bounds = array<i64: 32, 32>}, {transform_indices = @transform_2, window_bounds = array<i64: 1, 32>}, {transform_indices = @transform_3, window_bounds = array<i64: 16, 32>}]} {
    %c0_i32 = arith.constant 0 : i32
    %0 = arith.cmpi eq, %arg2, %c0_i32 : i32
    %1 = arith.extui %0 : i1 to i32
    %c0_i32_0 = arith.constant 0 : i32
    %2 = arith.cmpi ne, %1, %c0_i32_0 : i32
    scf.if %2 {
      %cst_10 = arith.constant 0.000000e+00 : f32
      %14 = vector.broadcast %cst_10 : f32 to vector<16x32xf32>
      %c0_11 = arith.constant 0 : index
      %c0_12 = arith.constant 0 : index
      %15 = vector.load %arg7[%c0_11, %c0_12] : memref<16x32xf32, #tpu.memory_space<vmem>>, vector<16x32xf32>
      tpu.vector_store %arg7[%c0_11, %c0_12], %14 {strides = array<i32>} : memref<16x32xf32, #tpu.memory_space<vmem>>, vector<16x32xf32>,
    } else {
    }
    %c0 = arith.constant 0 : index
    %c0_1 = arith.constant 0 : index
    %3 = vector.load %arg7[%c0, %c0_1] : memref<16x32xf32, #tpu.memory_space<vmem>>, vector<16x32xf32>
    %c0_2 = arith.constant 0 : index
    %c0_3 = arith.constant 0 : index
    %4 = vector.load %arg3[%c0_2, %c0_3] : memref<16x32xf32, #tpu.memory_space<vmem>>, vector<16x32xf32>
    %5 = arith.truncf %4 : vector<16x32xf32> to vector<16x32xbf16>
    %c0_4 = arith.constant 0 : index
    %c0_5 = arith.constant 0 : index
    %6 = vector.load %arg4[%c0_4, %c0_5] : memref<32x32xf32, #tpu.memory_space<vmem>>, vector<32x32xf32>
    %7 = arith.truncf %6 : vector<32x32xf32> to vector<32x32xbf16>
    %cst = arith.constant dense<0.000000e+00> : vector<16x32xf32>
    %8 = tpu.matmul %5, %7, %cst {dimension_numbers = #tpu.dot_dimension_numbers<[1], [0], [0], [1], [0, 0, 1, 1], [], []>} : vector<16x32xbf16>, vector<32x32xbf16>, vector<16x32xf32> -> vector<16x32xf32>
    %9 = arith.addf %3, %8 : vector<16x32xf32>
    %c0_6 = arith.constant 0 : index
    %c0_7 = arith.constant 0 : index
    %10 = vector.load %arg7[%c0_6, %c0_7] : memref<16x32xf32, #tpu.memory_space<vmem>>, vector<16x32xf32>
    tpu.vector_store %arg7[%c0_6, %c0_7], %9 {strides = array<i32>} : memref<16x32xf32, #tpu.memory_space<vmem>>, vector<16x32xf32>,
    %c0_i32_8 = arith.constant 0 : i32
    %11 = arith.cmpi eq, %arg2, %c0_i32_8 : i32
    %12 = arith.extui %11 : i1 to i32
    %c0_i32_9 = arith.constant 0 : i32
    %13 = arith.cmpi ne, %12, %c0_i32_9 : i32
    scf.if %13 {
      %c0_10 = arith.constant 0 : index
      %c0_11 = arith.constant 0 : index
      %14 = vector.load %arg7[%c0_10, %c0_11] : memref<16x32xf32, #tpu.memory_space<vmem>>, vector<16x32xf32>
      %c0_12 = arith.constant 0 : index
      %c0_13 = arith.constant 0 : index
      %15 = vector.load %arg5[%c0_12, %c0_13] : memref<1x32xf32, #tpu.memory_space<vmem>>, vector<1x32xf32>
      %16 = vector.broadcast %15 : vector<1x32xf32> to vector<16x32xf32>
      %17 = arith.addf %14, %16 : vector<16x32xf32>
      %c0_14 = arith.constant 0 : index
      %c0_15 = arith.constant 0 : index
      %18 = vector.load %arg6[%c0_14, %c0_15] : memref<16x32xf32, #tpu.memory_space<vmem>>, vector<16x32xf32>
      tpu.vector_store %arg6[%c0_14, %c0_15], %17 {strides = array<i32>} : memref<16x32xf32, #tpu.memory_space<vmem>>, vector<16x32xf32>,
    } else {
    }
    return
  }
  func.func @transform_0(%arg0: i32, %arg1: i32, %arg2: i32) -> (i32, i32) {
    %c0_i32 = arith.constant 0 : i32
    return %arg0, %arg2 : i32, i32
  }
  func.func @transform_1(%arg0: i32, %arg1: i32, %arg2: i32) -> (i32, i32) {
    %c0_i32 = arith.constant 0 : i32
    return %arg2, %arg1 : i32, i32
  }
  func.func @transform_2(%arg0: i32, %arg1: i32, %arg2: i32) -> (i32, i32) {
    %c0_i32 = arith.constant 0 : i32
    %c0_i32_0 = arith.constant 0 : i32
    return %c0_i32, %arg1 : i32, i32
  }
  func.func @transform_3(%arg0: i32, %arg1: i32, %arg2: i32) -> (i32, i32) {
    %c0_i32 = arith.constant 0 : i32
    return %arg0, %arg1 : i32, i32
  }
}

</mosaic_0001>

<bundles_post_ra>
// kernel: tpu_custom_call.1
= control target key start
LH: loop header
LB: loop body
LE: loop exit
PB: predicated region body
PF: predicated region fallthrough
CT: control target
= control target key end

     0   :  { %8 = vsyncpa [#allocation4], 0  ;;  %s319_s0 = inlined_call_operand.hbm [shape: f32[16,32], index: 0, kind: input, shape index: {}]   ;;  %s320_s1 = inlined_call_operand.hbm [shape: f32[32,32], index: 1, kind: input, shape index: {}]   ;;  %s321_s2 = inlined_call_operand.vmem [shape: f32[1,32], index: 2, kind: input, shape index: {}]   ;;  %s322_s3 = inlined_call_operand.hbm [shape: f32[16,32], index: 3, kind: output, shape index: {}]  }
   0x1   :  { %9 = vsyncpa [#allocation7], 0 }
   0x2   :  { %10 = vsyncpa [#allocation5], 0  ;;  %s237_s12 = smov [#allocation3]   ;;  %s165_s16 = scalar_lea.hbm %s319_s0, 256 }
   0x3   :  { %s16_s13 = sshll.u32 %s237_s12, 4  ;;  %p166_p0 = scmp.ne.s32.totalorder %s319_s0, %s165_s16  ;;  %s17_s13 = int_to_ptr.vmem [resolvable:$true] %s16_s13 }
   0x4   :  { %p169_p1 = scmp.lt.u32.totalorder %s165_s16, %s319_s0 }
   0x6   :  { %p171_p2 = pnand %p169_p1, %p166_p0 }
   0x8   :  { %174 = shalt.err (!%p171_p2)
}
   0x9   :  { %s175_s21 = scalar_lea.vmem %s17_s13, 256  ;;  %p180_p4 = scmp.lt.s32.totalorder %s17_s13, %s17_s13 }
   0xa   :  { %p176_p3 = scmp.ne.s32.totalorder %s17_s13, %s175_s21  ;;  %p181_p5 = scmp.lt.s32.totalorder %s175_s21, %s175_s21 }
   0xc   :  { %p182_p6 = por %p181_p5, %p180_p4 }
   0xe   :  { %p183_p7 = pnand %p182_p6, %p176_p3 }
  0x10   :  { %186 = shalt.err (!%p183_p7)
}
  0x11   :  { %s238_s22 = smov 128   ;;  %s239_s23 = smov 8  }
  0x12   :  { %22 = dma.hbm_to_vmem [thread:$0]  %s319_s0, 256, %s17_s13, [#allocation4], %s238_s22, %s238_s22, %s239_s23  }
  0x13   :  { %s240_s26 = smov [#allocation6]   ;;  %s187_s30 = scalar_lea.hbm %s320_s1, 512 }
  0x14   :  { %s28_s27 = sshll.u32 %s240_s26, 4  ;;  %p188_p8 = scmp.ne.s32.totalorder %s320_s1, %s187_s30  ;;  %s29_s27 = int_to_ptr.vmem [resolvable:$true] %s28_s27 }
  0x15   :  { %p191_p9 = scmp.lt.u32.totalorder %s187_s30, %s320_s1 }
  0x17   :  { %p193_p10 = pnand %p191_p9, %p188_p8 }
  0x19   :  { %196 = shalt.err (!%p193_p10)
}
  0x1a   :  { %s197_s8 = scalar_lea.vmem %s29_s27, 512  ;;  %p202_p12 = scmp.lt.s32.totalorder %s29_s27, %s29_s27 }
  0x1b   :  { %p198_p11 = scmp.ne.s32.totalorder %s29_s27, %s197_s8  ;;  %p203_p13 = scmp.lt.s32.totalorder %s197_s8, %s197_s8 }
  0x1d   :  { %p204_p0 = por %p203_p13, %p202_p12 }
  0x1f   :  { %p205_p1 = pnand %p204_p0, %p198_p11 }
  0x21   :  { %208 = shalt.err (!%p205_p1)
}
  0x22   :  { %34 = dma.hbm_to_vmem [thread:$0]  %s320_s1, 512, %s29_s27, [#allocation7], %s238_s22, %s238_s22, %s239_s23  }
  0x23   :  { %231 = dma.done.wait [#allocation4], 256  }
  0x24   :  { %232 = vsyncadd [#allocation4], 4294967040 }
  0x25   :  { %233 = dma.done.wait [#allocation7], 512  }
  0x26   :  { %234 = vsyncadd [#allocation7], 4294966784  ;;  %vm48_vm0 = vcmask 261120   ;;  %v241_v0 = vmov 0.0   ;;  %vm242_vm1 = vmmov 0   ;;  %v56_v1 = vld [vmem:[#allocation6] sm:$0xff] }
  0x27   :  { %150 = vmatprep.subr.bf16.mxu0 %v241_v0  ;;  %154 = vmatprep.mubr.msk.bf16.mxu0 %vm242_vm1, %v241_v0  ;;  %49 = vst.msk [vmem:[#allocation2] sm:$0xff] %vm48_vm0, %v241_v0  ;;  %50 = vst.msk [vmem:[#allocation2 + $0x8] sm:$0xff] %vm48_vm0, %v241_v0  ;;  %v57_v2 = vld [vmem:[#allocation6 + $0x8] sm:$0xff]  ;;  %v58_v3 = vld [vmem:[#allocation6 + $0x10] sm:$0xff]  ;;  %s243_s11 = smov [#allocation8]  }
  0x28   :  { %v60_v4 = vpack.c.bf16 %v57_v2, %v56_v1  ;;  %v59_v5 = vld [vmem:[#allocation6 + $0x18] sm:$0xff]  ;;  %v53_v7 = vld [vmem:[#allocation3] sm:$0xff]  ;;  %v146_v18 = vld [vmem:[%s321_s2] ss:$0 sm:$0xff]  ;;  %s132_s12 = sshll.u32 %s243_s11, 4  ;;  %s133_s12 = int_to_ptr.vmem [resolvable:$true] %s132_s12 }
  0x29   :  { %v61_v6 = vpack.c.bf16 %v59_v5, %v58_v3  ;;  %v54_v8 = vld [vmem:[#allocation3 + $0x8] sm:$0xff]  ;;  %s209_s13 = scalar_lea.vmem %s133_s12, 256  ;;  %p214_p3 = scmp.lt.s32.totalorder %s133_s12, %s133_s12 }
  0x2a   :  { %151 = vmatpush3.bf16.msra.mxu0 %v60_v4  ;;  %v55_v9 = vpack.c.bf16 %v54_v8, %v53_v7  ;;  %p210_p2 = scmp.ne.s32.totalorder %s133_s12, %s209_s13  ;;  %p215_p4 = scmp.lt.s32.totalorder %s209_s13, %s209_s13 }
  0x2b   :  { %152 = vmatprep.subr.bf16.mxu0 %v241_v0 }
  0x2c   :  { %p216_p5 = por %p215_p4, %p214_p3 }
  0x2e   :  { %153 = vmatpush3.bf16.msra.mxu0 %v61_v6  ;;  %v51_v10 = vld [vmem:[#allocation2] sm:$0xff]  ;;  %v52_v12 = vld [vmem:[#allocation2 + $0x8] sm:$0xff]  ;;  %p217_p6 = pnand %p216_p5, %p210_p2 }
  0x31   :  { %155 = vmatmul.mubr.msk.bf16.vlgmr.msra.gmra.mrb[0].mxu0 %vm48_vm0, %v55_v9 }
 0x104   :  { %v100_v11 = vpop.f32.mrb[0].mxu0 }
 0x105   :  { %v107_v13 = vadd.f32 %v100_v11, %v51_v10  ;;  %v156_v14 = vpop.f32.mrb[1].mxu0 }
 0x106   :  { %v103_v15 = vpop.f32.mrb[2].mxu0 }
 0x107   :  { %109 = vst.msk [vmem:[#allocation2] sm:$0xff] %vm48_vm0, %v107_v13  ;;  %v108_v16 = vadd.f32 %v103_v15, %v52_v12  ;;  %v157_v17 = vpop.f32.mrb[3].mxu0 }
 0x109   :  { %110 = vst.msk [vmem:[#allocation2 + $0x8] sm:$0xff] %vm48_vm0, %v108_v16 }
 0x10e   :  { %v114_v19 = vld [vmem:[#allocation2] sm:$0xff] }
 0x10f   :  { %v123_v20 = vadd.f32 %v146_v18, %v114_v19 }
 0x110   :  { %v115_v21 = vld [vmem:[#allocation2 + $0x8] sm:$0xff] }
 0x111   :  { %v124_v22 = vadd.f32 %v146_v18, %v115_v21  ;;  %125 = vst.msk [vmem:[#allocation8] sm:$0xff] %vm48_vm0, %v123_v20 }
 0x113   :  { %126 = vst.msk [vmem:[#allocation8 + $0x8] sm:$0xff] %vm48_vm0, %v124_v22 }
 0x114   :  { %220 = shalt.err (!%p217_p6)
}
 0x115   :  { %s221_s15 = scalar_lea.hbm %s322_s3, 256 }
 0x116   :  { %p222_p7 = scmp.ne.s32.totalorder %s322_s3, %s221_s15  ;;  %p225_p8 = scmp.lt.u32.totalorder %s221_s15, %s322_s3 }
 0x118   :  { %p227_p9 = pnand %p225_p8, %p222_p7 }
 0x11a   :  { %230 = shalt.err (!%p227_p9)
}
 0x11b   :  { %138 = dma.vmem_to_hbm [thread:$0]  %s133_s12, 256, %s322_s3, [#allocation5], %s238_s22, %s238_s22, %s239_s23  }
 0x11c   :  { %235 = dma.done.wait [#allocation5], 256  }
 0x11d   :  { %236 = vsyncadd [#allocation5], 4294967040 }
 0x11e   :  { %142 = vsyncpa [#allocation4], 1 }
 0x11f   :  { %143 = vsyncpa [#allocation7], 1 }
 0x120   :  { %144 = vsyncpa [#allocation5], 1 }

</bundles_post_ra>
